<compile_context>
chip_gen: v7x
topology: tpu7x:2x2x1
jax: 0.10.0
libtpu: 0.0.40
codegen_flags: <defaults>
</compile_context>

<pallas_src>
import functools

import jax
import jax.numpy as jnp
from jax.experimental import pallas as pl
from jax.experimental.pallas import tpu as pltpu


def _row_losses(x_ref, t_ref, w_ref, gamma):
    """Per-row focal loss for the current (TILE_N, C) tile -> (TILE_N, 1) f32 column."""
    x = x_ref[...].astype(jnp.float32)          # upcast in-kernel; HBM read stays narrow
    t = t_ref[...]                              # (T, 1) int32
    w = w_ref[...].astype(jnp.float32)          # (T, 1) per-row alpha weight

    tn, c = x.shape
    col = jax.lax.broadcasted_iota(jnp.int32, (tn, c), 1)
    onehot = col == t                           # iota-compare gather of the target logit

    m = jnp.max(x, axis=-1, keepdims=True)      # numerically stable logsumexp
    lse = m + jnp.log(jnp.sum(jnp.exp(x - m), axis=-1, keepdims=True))
    tgt = jnp.sum(jnp.where(onehot, x, 0.0), axis=-1, keepdims=True)

    ce = lse - tgt                              # -log softmax[target]
    pt = jnp.exp(-ce)
    d = 1.0 - pt
    # gamma arrives as a Python int when integral -> lax.integer_pow -> VPU multiplies
    # (no EUP pow serialization); non-integer gamma falls back to jnp power.
    return (d ** gamma) * ce * w                # (T, 1)


def _valid_row_mask(tile_n, n_rows):
    """Mask for edge tiles when N is not a multiple of TILE_N."""
    row = jax.lax.broadcasted_iota(jnp.int32, (tile_n, 1), 0) + pl.program_id(0) * tile_n
    return row < n_rows


def _focal_reduce_kernel(x_ref, t_ref, w_ref, o_ref, *, gamma, reduction, n_rows, tile_n):
    """'mean'/'sum': accumulate tile sums into an SMEM scalar, finalize on the last step."""
    pid = pl.program_id(0)

    @pl.when(pid == 0)
    def _init():
        o_ref[0] = jnp.float32(0.0)

    focal = _row_losses(x_ref, t_ref, w_ref, gamma)
    focal = jnp.where(_valid_row_mask(tile_n, n_rows), focal, 0.0)   # drop padded rows
    o_ref[0] += jnp.sum(focal)

    if reduction == "mean":
        @pl.when(pid == pl.num_programs(0) - 1)
        def _finalize():
            o_ref[0] = o_ref[0] * jnp.float32(1.0 / max(n_rows, 1))


def _focal_none_kernel(x_ref, t_ref, w_ref, o_ref, *, gamma, n_rows, tile_n):
    """'none': per-row losses written lane-dense (rows of this tile along the lane dim)."""
    focal = _row_losses(x_ref, t_ref, w_ref, gamma)                  # (T, 1)
    focal = jnp.where(_valid_row_mask(tile_n, n_rows), focal, 0.0)
    # Column -> row without relying on sublane->lane reshape lowering:
    # broadcast against an identity pattern and reduce over sublanes.
    ii = jax.lax.broadcasted_iota(jnp.int32, (tile_n, tile_n), 0)
    jj = jax.lax.broadcasted_iota(jnp.int32, (tile_n, tile_n), 1)
    row_out = jnp.sum(jnp.where(ii == jj, focal, 0.0), axis=0, keepdims=True)  # (1, T)
    o_ref[0] = row_out


def _pick_tile_n(n, c, itemsize, cap):
    """Rows per tile: ~2 MiB of logits per buffer (x2 double-buffer) -> safe on v7x VMEM."""
    target_bytes = 2 * 1024 * 1024
    t = max(8, min(cap, target_bytes // max(1, c * itemsize)))
    t = max(8, (t // 8) * 8)                 # second-minor block dim multiple of 8
    n8 = max(8, ((n + 7) // 8) * 8)
    return min(t, n8)


def focal_loss(inputs, targets, *, gamma=2, alpha=None, reduction="mean", tile_n=None):
    """JAX/Pallas equivalent of FocalLoss.forward. inputs (N, C), targets (N,)."""
    n, c = inputs.shape
    if n == 0:
        if reduction == "mean":
            return jnp.float32(jnp.nan)      # matches torch: mean of empty is NaN
        if reduction == "sum":
            return jnp.float32(0.0)
        return jnp.zeros((0,), jnp.float32)

    # Integral gamma -> Python int so the kernel takes the multiply path, not EUP pow.
    if isinstance(gamma, float) and float(gamma).is_integer():
        gamma = int(gamma)

    targets = targets.astype(jnp.int32).reshape(n, 1)

    # Alpha handling mirrors the PyTorch module: per-row weight = alpha[target].
    # (The scalar-alpha two-entry table [alpha, 1-alpha] only makes sense for C == 2,
    #  exactly as in the reference module.)
    if alpha is None:
        weights = jnp.ones((n, 1), dtype=jnp.float32)
    else:
        if isinstance(alpha, (float, int)):
            alpha_tbl = jnp.asarray([alpha, 1.0 - alpha], dtype=jnp.float32)
        else:
            alpha_tbl = jnp.asarray(alpha, dtype=jnp.float32)
        weights = alpha_tbl[targets.reshape(-1)].reshape(n, 1)

    itemsize = jnp.dtype(inputs.dtype).itemsize
    cap = 256 if reduction == "none" else 512
    if tile_n is None:
        tile_n = _pick_tile_n(n, c, itemsize, cap)
    tile_n = max(8, (tile_n // 8) * 8)
    grid = (pl.cdiv(n, tile_n),)
    # TODO(synk): for very large C (tens of thousands of classes) add a second grid axis
    # over C with an online logsumexp instead of a full (TILE_N, C) block.
    # TODO(synk): on v7x a leading size-2 parallel axis producing two partial sums would
    # use both TensorCores for the mean/sum reduction.

    in_specs = [
        pl.BlockSpec((tile_n, c), lambda i: (i, 0)),   # logits tile, original dtype
        pl.BlockSpec((tile_n, 1), lambda i: (i, 0)),   # targets
        pl.BlockSpec((tile_n, 1), lambda i: (i, 0)),   # per-row alpha weights
    ]
    cost = pl.CostEstimate(
        flops=7 * n * c,
        transcendentals=n * c + 2 * n,
        bytes_accessed=n * c * itemsize + 8 * n + 4 * n,
    )

    if reduction in ("mean", "sum"):
        kernel = functools.partial(
            _focal_reduce_kernel, gamma=gamma, reduction=reduction, n_rows=n, tile_n=tile_n
        )
        out = pl.pallas_call(
            kernel,
            out_shape=jax.ShapeDtypeStruct((1,), jnp.float32),
            grid=grid,
            in_specs=in_specs,
            out_specs=pl.BlockSpec(memory_space=pltpu.SMEM),   # scalar lives in SMEM
            compiler_params=pltpu.CompilerParams(dimension_semantics=("arbitrary",)),
            cost_estimate=cost,
        )(inputs, targets, weights)
        return out[0]

    # reduction == 'none': lane-dense (num_tiles, 1, TILE_N) output, trimmed in the wrapper.
    num_tiles = grid[0]
    kernel = functools.partial(_focal_none_kernel, gamma=gamma, n_rows=n, tile_n=tile_n)
    out = pl.pallas_call(
        kernel,
        out_shape=jax.ShapeDtypeStruct((num_tiles, 1, tile_n), jnp.float32),
        grid=grid,
        in_specs=in_specs,
        out_specs=pl.BlockSpec((1, 1, tile_n), lambda i: (i, 0, 0)),
        compiler_params=pltpu.CompilerParams(dimension_semantics=("parallel",)),
        cost_estimate=cost,
    )(inputs, targets, weights)
    return out.reshape(-1)[:n]


def _reference_focal_loss(inputs, targets, gamma=2, alpha=None, reduction="mean"):
    x = inputs.astype(jnp.float32)
    lse = jax.nn.logsumexp(x, axis=-1)
    tgt = jnp.take_along_axis(x, targets[:, None].astype(jnp.int32), axis=-1)[:, 0]
    ce = lse - tgt
    pt = jnp.exp(-ce)
    fl = (1.0 - pt) ** gamma * ce
    if alpha is not None:
        if isinstance(alpha, (float, int)):
            tbl = jnp.asarray([alpha, 1.0 - alpha], jnp.float32)
        else:
            tbl = jnp.asarray(alpha, jnp.float32)
        fl = fl * tbl[targets]
    if reduction == "mean":
        return fl.mean()
    if reduction == "sum":
        return fl.sum()
    return fl


if __name__ == "__main__":
    key = jax.random.PRNGKey(0)
    k1, k2 = jax.random.split(key)

    # Small shapes; N not a multiple of the tile exercises edge-row masking,
    # tile_n=16 forces a multi-step grid.
    N, C = 49, 32
    logits = jax.random.normal(k1, (N, C), dtype=jnp.float32)
    targets = jax.random.randint(k2, (N,), 0, C, dtype=jnp.int32)

    # 1) default module config: gamma=2, alpha=None, reduction='mean'
    loss_mean = jax.block_until_ready(
        focal_loss(logits, targets, gamma=2, alpha=None, reduction="mean", tile_n=16))
    ref_mean = _reference_focal_loss(logits, targets, 2, None, "mean")
    assert jnp.allclose(loss_mean, ref_mean, rtol=1e-5, atol=1e-6), (loss_mean, ref_mean)

    # 2) sum reduction
    loss_sum = jax.block_until_ready(
        focal_loss(logits, targets, gamma=2, alpha=None, reduction="sum", tile_n=16))
    ref_sum = _reference_focal_loss(logits, targets, 2, None, "sum")
    assert jnp.allclose(loss_sum, ref_sum, rtol=1e-5, atol=1e-5), (loss_sum, ref_sum)

    # 3) per-sample (reduction='none'), lane-dense output path
    loss_none = jax.block_until_ready(
        focal_loss(logits, targets, gamma=2, alpha=None, reduction="none", tile_n=16))
    ref_none = _reference_focal_loss(logits, targets, 2, None, "none")
    assert loss_none.shape == (N,)
    assert jnp.allclose(loss_none, ref_none, rtol=1e-5, atol=1e-6)

    # 4) per-class alpha weights
    alpha_vec = 0.25 + 0.5 * jnp.arange(C, dtype=jnp.float32) / C
    loss_a = jax.block_until_ready(
        focal_loss(logits, targets, gamma=2, alpha=alpha_vec, reduction="mean", tile_n=16))
    ref_a = _reference_focal_loss(logits, targets, 2, alpha_vec, "mean")
    assert jnp.allclose(loss_a, ref_a, rtol=1e-5, atol=1e-6), (loss_a, ref_a)

    # 5) bf16 logits stream straight from HBM (no wrapper-side upcast)
    logits_bf16 = logits.astype(jnp.bfloat16)
    loss_bf16 = jax.block_until_ready(
        focal_loss(logits_bf16, targets, gamma=2, alpha=None, reduction="mean", tile_n=16))
    ref_bf16 = _reference_focal_loss(logits_bf16, targets, 2, None, "mean")
    assert jnp.allclose(loss_bf16, ref_bf16, rtol=1e-4, atol=1e-5), (loss_bf16, ref_bf16)

    print("KERNEL_OK")
</pallas_src>

<mosaic_0001>
module attributes {stable_mosaic.version = 11 : i64} {
  func.func @_focal_reduce_kernel(%arg0: i32, %arg1: memref<16x32xf32, #tpu.memory_space<vmem>>, %arg2: memref<16x1xi32, #tpu.memory_space<vmem>>, %arg3: memref<16x1xf32, #tpu.memory_space<vmem>>, %arg4: memref<1xf32, #tpu.memory_space<smem>>) attributes {dimension_semantics = [#tpu.dimension_semantics<arbitrary>], iteration_bounds = array<i64: 4>, scalar_prefetch = 0 : i64, scratch_operands = 0 : i64, tpu.core_type = #tpu.core_type<tc>, window_params = [{transform_indices = @transform_0, window_bounds = array<i64: 16, 32>}, {transform_indices = @transform_1, window_bounds = array<i64: 16, 1>}, {transform_indices = @transform_2, window_bounds = array<i64: 16, 1>}, {transform_indices = @transform_3, window_bounds = array<i64: 1>}]} {
    %c0_i32 = arith.constant 0 : i32
    %0 = arith.cmpi eq, %arg0, %c0_i32 : i32
    %1 = arith.extui %0 : i1 to i32
    %c0_i32_0 = arith.constant 0 : i32
    %2 = arith.cmpi ne, %1, %c0_i32_0 : i32
    scf.if %2 {
      %cst_16 = arith.constant 0.000000e+00 : f32
      %c0_17 = arith.constant 0 : index
      %49 = memref.load %arg4[%c0_17] : memref<1xf32, #tpu.memory_space<smem>>
      memref.store %cst_16, %arg4[%c0_17] : memref<1xf32, #tpu.memory_space<smem>>
    } else {
    }
    %c0 = arith.constant 0 : index
    %c0_1 = arith.constant 0 : index
    %3 = vector.load %arg1[%c0, %c0_1] : memref<16x32xf32, #tpu.memory_space<vmem>>, vector<16x32xf32>
    %c0_2 = arith.constant 0 : index
    %c0_3 = arith.constant 0 : index
    %4 = vector.load %arg2[%c0_2, %c0_3] : memref<16x1xi32, #tpu.memory_space<vmem>>, vector<16x1xi32>
    %c0_4 = arith.constant 0 : index
    %c0_5 = arith.constant 0 : index
    %5 = vector.load %arg3[%c0_4, %c0_5] : memref<16x1xf32, #tpu.memory_space<vmem>>, vector<16x1xf32>
    %6 = tpu.iota {dimensions = array<i32: 1>} : vector<16x32xi32>
    %7 = vector.broadcast %4 : vector<16x1xi32> to vector<16x32xi32>
    %8 = arith.cmpi eq, %6, %7 : vector<16x32xi32>
    %cst = arith.constant dense<0xFF800000> : vector<16xf32>
    %9 = vector.multi_reduction <maximumf>, %3, %cst [1] : vector<16x32xf32> to vector<16xf32>
    %10 = vector.shape_cast %9 : vector<16xf32> to vector<16x1xf32>
    %11 = vector.broadcast %10 : vector<16x1xf32> to vector<16x32xf32>
    %12 = arith.subf %3, %11 : vector<16x32xf32>
    %13 = math.exp %12 : vector<16x32xf32>
    %cst_6 = arith.constant dense<0.000000e+00> : vector<16xf32>
    %14 = vector.multi_reduction <add>, %13, %cst_6 [1] : vector<16x32xf32> to vector<16xf32>
    %15 = vector.shape_cast %14 : vector<16xf32> to vector<16x1xf32>
    %16 = math.log %15 : vector<16x1xf32>
    %17 = arith.addf %10, %16 : vector<16x1xf32>
    %cst_7 = arith.constant 0.000000e+00 : f32
    %18 = vector.broadcast %cst_7 : f32 to vector<16x32xf32>
    %19 = arith.select %8, %3, %18 : vector<16x32xi1>, vector<16x32xf32>
    %cst_8 = arith.constant dense<0.000000e+00> : vector<16xf32>
    %20 = vector.multi_reduction <add>, %19, %cst_8 [1] : vector<16x32xf32> to vector<16xf32>
    %21 = vector.shape_cast %20 : vector<16xf32> to vector<16x1xf32>
    %22 = arith.subf %17, %21 : vector<16x1xf32>
    %cst_9 = arith.constant 0.000000e+00 : f32
    %23 = vector.broadcast %cst_9 : f32 to vector<16x1xf32>
    %24 = arith.subf %23, %22 : vector<16x1xf32>
    %25 = math.exp %24 : vector<16x1xf32>
    %cst_10 = arith.constant 1.000000e+00 : f32
    %26 = vector.broadcast %cst_10 : f32 to vector<16x1xf32>
    %27 = arith.subf %26, %25 : vector<16x1xf32>
    %28 = arith.mulf %27, %27 : vector<16x1xf32>
    %29 = arith.mulf %28, %22 : vector<16x1xf32>
    %30 = arith.mulf %29, %5 : vector<16x1xf32>
    %31 = tpu.iota {dimensions = array<i32: 0>} : vector<16x1xi32>
    %c16_i32 = arith.constant 16 : i32
    %32 = arith.muli %arg0, %c16_i32 : i32
    %33 = vector.broadcast %32 : i32 to vector<16x1xi32>
    %34 = arith.addi %31, %33 : vector<16x1xi32>
    %c49_i32 = arith.constant 49 : i32
    %35 = vector.broadcast %c49_i32 : i32 to vector<16x1xi32>
    %36 = arith.cmpi slt, %34, %35 : vector<16x1xi32>
    %cst_11 = arith.constant 0.000000e+00 : f32
    %37 = vector.broadcast %cst_11 : f32 to vector<16x1xf32>
    %38 = arith.select %36, %30, %37 : vector<16x1xi1>, vector<16x1xf32>
    %c0_12 = arith.constant 0 : index
    %39 = memref.load %arg4[%c0_12] : memref<1xf32, #tpu.memory_space<smem>>
    %40 = vector.shape_cast %38 : vector<16x1xf32> to vector<1x16x1xf32>
    %cst_13 = arith.constant dense<0.000000e+00> : vector<1xf32>
    %41 = vector.multi_reduction <add>, %40, %cst_13 [1, 2] : vector<1x16x1xf32> to vector<1xf32>
    %42 = vector.shape_cast %41 : vector<1xf32> to vector<1x1x1xf32>
    %43 = vector.extract %42[0, 0, 0] : f32 from vector<1x1x1xf32>
    %44 = arith.addf %39, %43 : f32
    %c0_14 = arith.constant 0 : index
    %45 = memref.load %arg4[%c0_14] : memref<1xf32, #tpu.memory_space<smem>>
    memref.store %44, %arg4[%c0_14] : memref<1xf32, #tpu.memory_space<smem>>
    %c3_i32 = arith.constant 3 : i32
    %46 = arith.cmpi eq, %arg0, %c3_i32 : i32
    %47 = arith.extui %46 : i1 to i32
    %c0_i32_15 = arith.constant 0 : i32
    %48 = arith.cmpi ne, %47, %c0_i32_15 : i32
    scf.if %48 {
      %c0_16 = arith.constant 0 : index
      %49 = memref.load %arg4[%c0_16] : memref<1xf32, #tpu.memory_space<smem>>
      %cst_17 = arith.constant 0.0204081628 : f32
      %50 = arith.mulf %49, %cst_17 : f32
      %c0_18 = arith.constant 0 : index
      %51 = memref.load %arg4[%c0_18] : memref<1xf32, #tpu.memory_space<smem>>
      memref.store %50, %arg4[%c0_18] : memref<1xf32, #tpu.memory_space<smem>>
    } else {
    }
    return
  }
  func.func @transform_0(%arg0: i32) -> (i32, i32) {
    %c0_i32 = arith.constant 0 : i32
    %c0_i32_0 = arith.constant 0 : i32
    return %arg0, %c0_i32 : i32, i32
  }
  func.func @transform_1(%arg0: i32) -> (i32, i32) {
    %c0_i32 = arith.constant 0 : i32
    %c0_i32_0 = arith.constant 0 : i32
    return %arg0, %c0_i32 : i32, i32
  }
  func.func @transform_2(%arg0: i32) -> (i32, i32) {
    %c0_i32 = arith.constant 0 : i32
    %c0_i32_0 = arith.constant 0 : i32
    return %arg0, %c0_i32 : i32, i32
  }
  func.func @transform_3(%arg0: i32) -> i32 {
    %c0_i32 = arith.constant 0 : i32
    %c0_i32_0 = arith.constant 0 : i32
    return %c0_i32 : i32
  }
}

</mosaic_0001>

<bundles_post_ra>
// kernel: tpu_custom_call.1
= control target key start
LH: loop header
LB: loop body
LE: loop exit
PB: predicated region body
PF: predicated region fallthrough
CT: control target
= control target key end

     0   :  { %8 = vsyncpa [#allocation3], 0  ;;  %s541_s12 = smov 0   ;;  %s600_s0 = inlined_call_operand.vmem [shape: f32[49,32], index: 0, kind: input, shape index: {}]   ;;  %s601_s1 = inlined_call_operand.vmem [shape: s32[49,1], index: 1, kind: input, shape index: {}]   ;;  %s602_s2 = inlined_call_operand.vmem [shape: f32[49,1], index: 2, kind: input, shape index: {}]   ;;  %s603_s3 = inlined_call_operand.hbm [shape: f32[1], index: 3, kind: output, shape index: {}]  }
   0x1 LB: > { %s547_s13 = sadd.s32 4294967295, %s516_s12   ;;  %p441_p0 = scmp.ge.s32.totalorder %s516_s12, 1  ;;  %s516_s12 = sphi %s541_s12, %s14_s12  }
   0x2   : > { %p180_p1 = scmp.lt.s32.totalorder %s516_s12, 5 }
   0x4   : > { %p181_p2 = pnand %p441_p0, %p180_p1 }
   0x5   : > { %s442_s14 = sshll.u32 (!%p181_p2), %s547_s13, 1  ;;  %v518_v0 = vmov (!%p181_p2), 0   ;;  %vm285_vm0 = vcmask (!%p181_p2), 261120   ;;  %v275_v11 = vlaneseq (!%p181_p2)  ;;  %s449_s22 = sshll.u32 (!%p181_p2), %s547_s13, 4  ;;  %vm346_vm5 = vcmask (!%p181_p2), 7168  }
   0x6   : > { %184 = sbr.rel (%p181_p2) target bundleno = 581 (0x245), region = 32  ;;  %p226_p3 = scmp.lt.s32.totalorder (!%p181_p2), %s442_s14, 6  ;;  %480 = vset.pattern.permute.xlu1 (!%p181_p2), %v518_v0  ;;  %481 = vset.pattern.permute.xlu0 (!%p181_p2), %v518_v0  ;;  %v338_v44 = vstv (!%p181_p2), %s449_s22 }
   0x7   : > { %v276_v15 = vand.u32 (!%p181_p2), 127, %v275_v11  ;;  %v335_v42 = vshrl.u32 (!%p181_p2), %v275_v11, 7  ;;  %p465_p4 = scmp.eq.s32.totalorder (!%p181_p2), %s547_s13, 0  ;;  %s519_s26 = smov (!%p181_p2), 0.0  }
   0x8   : > { %p466_p5 = scmp.eq.s32.totalorder (!%p181_p2), %s547_s13, 3  ;;  %s494_s6 = scalar_lea.hbm (!%p181_p2), %s603_s3, 16 }
   0x9   : > { %v336_v45 = vadd.s32 (!%p181_p2), 8, %v335_v42  ;;  %v339_v49 = vadd.s32 (!%p181_p2), %v338_v44, %v335_v42  ;;  %p495_p6 = scmp.ne.s32.totalorder (!%p181_p2), %s603_s3, %s494_s6  ;;  %p500_p9 = scmp.lt.u32.totalorder (!%p181_p2), %s494_s6, %s603_s3 }
   0xb   : > { %v340_v52 = vadd.s32 (!%p181_p2), %v338_v44, %v336_v45  ;;  %vm341_vm3 = vcmp.lt.s32.totalorder (!%p181_p2), %v339_v49, 49  ;;  %p496_p7 = pnand (!%p181_p2), %p495_p6, %p466_p5 }
   0xd   : > { %s605_s14 = smov (!%p226_p3, %s442_s14), 6  ;;  %vm342_vm4 = vcmp.lt.s32.totalorder %v340_v52, 49  ;;  %458 = sst [smem:[#allocation2]] (%p465_p4), %s519_s26 }
   0xe   : > { %s552_s15 = sshll.u32 %s605_s14, 3  ;;  %s345_s27 = sld [smem:[#allocation2]] }
   0xf   : > { %s229_s18 = scalar_lea.vmem %s600_s0, %s552_s15  ;;  %s243_s21 = scalar_lea.vmem %s601_s1, %s552_s15 }
  0x10   : > { %v269_v1 = vld [vmem:[%s229_s18] sm:$0xff]  ;;  %v270_v2 = vld [vmem:[%s229_s18 + $0x8] sm:$0xff]  ;;  %s257_s25 = scalar_lea.vmem %s602_s2, %s552_s15  ;;  %p497_p8 = pneg %p496_p7 }
  0x11   : > { %v271_v3 = vld [vmem:[%s243_s21] sm:$0xff]  ;;  %v286_v4 = vsel %vm285_vm0, %v269_v1, -inf  ;;  %v272_v5 = vld [vmem:[%s243_s21 + $0x8] sm:$0xff]  ;;  %v289_v6 = vsel %vm285_vm0, %v270_v2, -inf }
  0x12   : > { %278 = vperm.xlu1 %480, %v271_v3   ;;  %287 = vmax.xlane.f32.xlu0 %v286_v4  ;;  %v273_v48 = vld [vmem:[%s257_s25] sm:$0xff]  ;;  %v274_v55 = vld [vmem:[%s257_s25 + $0x8] sm:$0xff]  ;;  %p502_p10 = pnand %p500_p9, %p497_p8 }
  0x16   : > { %281 = vperm.xlu1 %480, %v272_v5   ;;  %290 = vmax.xlane.f32.xlu0 %v289_v6 }
  0x91   : > { %v279_v14 = vpop.permute.xlu1 %278 }
  0x92   : > { %vm283_vm1 = vcmp.eq.s32.totalorder %v276_v15, %v279_v14 }
  0x93   : > { %v310_v18 = vsel %vm283_vm1, %v269_v1, 0.0 }
  0x94   : > { %v312_v20 = vsel %vm285_vm0, %v310_v18, 0.0 }
  0x95   : > { %v282_v16 = vpop.permute.xlu1 %281 }
  0x96   : > { %vm284_vm2 = vcmp.eq.s32.totalorder %v276_v15, %v282_v16 }
  0x97   : > { %v311_v22 = vsel %vm284_vm2, %v270_v2, 0.0 }
  0x98   : > { %v315_v24 = vsel %vm285_vm0, %v311_v22, 0.0 }
  0x9f   : > { %v288_v7 = vpop.xlane.xlu0 %287 }
  0xa0   : > { %v292_v8 = vsub.f32 %v269_v1, %v288_v7 }
  0xa2   : > { %v294_v9 = vmul.f32 1.442695, %v292_v8 }
  0xa3   : > { %v291_v10 = vpop.xlane.xlu0 %290 }
  0xa4   : > { %482 = vpow2.f32 %v294_v9  ;;  %v293_v12 = vsub.f32 %v270_v2, %v291_v10 }
  0xa6   : > { %v296_v13 = vmul.f32 1.442695, %v293_v12 }
  0xa8   : > { %484 = vpow2.f32 %v296_v13 }
  0xae   : > { %v483_v17 = vpop.eup %482 }
  0xaf   : > { %v298_v19 = vsel %vm285_vm0, %v483_v17, 0.0 }
  0xb0   : > { %299 = vadd.xlane.f32.xlu0 %v298_v19 }
  0xb2   : > { %v485_v21 = vpop.eup %484 }
  0xb3   : > { %v301_v23 = vsel %vm285_vm0, %v485_v21, 0.0 }
  0xb4   : > { %302 = vadd.xlane.f32.xlu1 %v301_v23  ;;  %313 = vadd.xlane.f32.xlu0 %v312_v20 }
  0xb8   : > { %316 = vadd.xlane.f32.xlu0 %v315_v24 }
 0x13d   : > { %v300_v25 = vpop.xlane.xlu0 %299 }
 0x13e   : > { %486 = vlog2.f32 %v300_v25 }
 0x141   : > { %v303_v26 = vpop.xlane.xlu1 %302  ;;  %v314_v29 = vpop.xlane.xlu0 %313 }
 0x142   : > { %488 = vlog2.f32 %v303_v26 }
 0x145   : > { %v317_v36 = vpop.xlane.xlu0 %316 }
 0x148   : > { %v487_v27 = vpop.eup %486 }
 0x149   : > { %v305_v28 = vmul.f32 0.6931472, %v487_v27 }
 0x14b   : > { %v308_v30 = vadd.f32 %v305_v28, %v288_v7 }
 0x14c   : > { %v489_v31 = vpop.eup %488 }
 0x14d   : > { %v307_v32 = vmul.f32 0.6931472, %v489_v31  ;;  %v318_v33 = vsub.f32 %v308_v30, %v314_v29 }
 0x14f   : > { %v320_v34 = vsub.f32 0.0, %v318_v33  ;;  %v309_v35 = vadd.f32 %v307_v32, %v291_v10 }
 0x151   : > { %v322_v37 = vmul.f32 1.442695, %v320_v34  ;;  %v319_v38 = vsub.f32 %v309_v35, %v317_v36 }
 0x153   : > { %490 = vpow2.f32 %v322_v37  ;;  %v321_v39 = vsub.f32 0.0, %v319_v38 }
 0x155   : > { %v324_v40 = vmul.f32 1.442695, %v321_v39 }
 0x157   : > { %492 = vpow2.f32 %v324_v40 }
 0x15d   : > { %v491_v41 = vpop.eup %490 }
 0x15e   : > { %v326_v43 = vsub.f32 1.0, %v491_v41 }
 0x160   : > { %v328_v46 = vmul.f32 %v326_v43, %v326_v43 }
 0x161   : > { %v493_v47 = vpop.eup %492 }
 0x162   : > { %v330_v50 = vmul.f32 %v328_v46, %v318_v33  ;;  %v327_v51 = vsub.f32 1.0, %v493_v47 }
 0x164   : > { %v332_v53 = vmul.f32 %v330_v50, %v273_v48  ;;  %v329_v54 = vmul.f32 %v327_v51, %v327_v51 }
 0x166   : > { %v331_v56 = vmul.f32 %v329_v54, %v319_v38  ;;  %v343_v58 = vsel %vm341_vm3, %v332_v53, 0.0 }
 0x167   : > { %v347_v60 = vsel %vm346_vm5, %v343_v58, 0.0 }
 0x168   : > { %v333_v57 = vmul.f32 %v331_v56, %v274_v55 }
 0x16a   : > { %v344_v59 = vsel %vm342_vm4, %v333_v57, 0.0 }
 0x16b   : > { %v348_v61 = vsel %vm346_vm5, %v344_v59, 0.0 }
 0x16c   : > { %v349_v62 = vadd.f32 %v348_v61, %v347_v60 }
 0x16e   : > { %350 = vadd.xlane.f32.xlu0 %v349_v62 }
 0x1fb   : > { %v351_v63 = vpop.xlane.xlu0 %350 }
 0x1fc   : > { %v352_v0 = vrot.slane %v351_v63, 4 }
 0x1fe   : > { %v353_v1 = vadd.f32 %v352_v0, %v351_v63 }
 0x200   : > { %v354_v2 = vrot.slane %v353_v1, 2 }
 0x202   : > { %v355_v3 = vadd.f32 %v354_v2, %v353_v1 }
 0x204   : > { %v356_v4 = vrot.slane %v355_v3, 1 }
 0x206   : > { %v357_v5 = vadd.f32 %v356_v4, %v355_v3 }
 0x208   : > { %455 = vpush %v357_v5 }
 0x239   : > { %s456_s28 = spop %455 }
 0x23a   : > { %s359_s29 = sadd.f32 %s456_s28, %s345_s27 }
 0x23c   : > { %361 = sst [smem:[#allocation2]] %s359_s29  ;;  %s367_s30 = smul.f32 0.020408163, %s359_s29 }
 0x23e   : > { %460 = sst [smem:[#allocation2]] (%p466_p5), %s367_s30 }
 0x23f   : > { %505 = shalt.err (!%p502_p10)
}
 0x240   : > { %s520_s11 = smov [#allocation2]  }
 0x241   : > { %462 = dma.smem_to_hbm (%p466_p5), %s520_s11, 16, %s603_s3, [#allocation3]  }
 0x242   : > { %511 = dma.done.wait (%p466_p5), [#allocation3], 16  }
 0x243   : > { %513 = vsyncadd (%p466_p5), [#allocation3], 4294967280 }
 0x244   : > { %382 = sfence }
 0x245 PF: > { %s14_s12 = sadd.s32 1, %s516_s12  }
 0x246   : > { %p11_p11 = scmp.ge.s32.totalorder %s14_s12, 6  }
 0x248   :  { %13 = sbr.rel (!%p11_p11) target bundleno = 1 (0x1), region = 75 }
 0x24f   :  { %388 = vsyncpa [#allocation3], 1 }
 0x250   :  { %390 = vsyncpa [#allocation3 + $0x1], 1 }

</bundles_post_ra>
